<compile_context>
chip_gen: v5e
topology: v5e:2x2
jax: 0.10.0
libtpu: 0.0.40
codegen_flags: <defaults>
</compile_context>

<pallas_src>
import functools

import jax
import jax.numpy as jnp
import numpy as np
from jax.experimental import pallas as pl
from jax.experimental.pallas import tpu as pltpu


def conve_kernel(sub_ref, rel_ref, obj_ref, wc_ref, cb_ref, wr_ref, fcb_ref,
                 bsum_ref, out_ref, lhs_scr):
    dim = sub_ref.shape[1]
    dpad = lhs_scr.shape[1] // 2

    # (#6) Assemble the conv LHS [sub | 0pad | rel | 0pad]; both halves start at a
    # lane-aligned column (0 and dpad, multiples of 128).  The matching rows of wc
    # for the pad lanes are zero, but the pad lanes must hold finite values
    # (uninitialized VMEM could be NaN), so zero the scratch first.
    if dim != dpad:  # static condition
        lhs_scr[...] = jnp.zeros_like(lhs_scr)
    lhs_scr[:, :dim] = sub_ref[...].astype(jnp.bfloat16)
    lhs_scr[:, dpad:dpad + dim] = rel_ref[...].astype(jnp.bfloat16)

    # conv2d (im2col + sub/rel interleave folded into wc) + bn0/bn1 folded into
    # (wc, cb), then ReLU.  (#8) PFpad columns keep z lane-dense.
    z = jnp.dot(lhs_scr[...], wc_ref[...],
                preferred_element_type=jnp.float32)              # (TB, PFpad) f32
    z = jnp.maximum(z + cb_ref[...], 0.0)

    # fc Linear + bn2 folded into (wr, fcb), ReLU.
    h = jnp.dot(z.astype(jnp.bfloat16), wr_ref[...],
                preferred_element_type=jnp.float32)              # (TB, dim) f32
    h = jnp.maximum(h + fcb_ref[...], 0.0)

    # x = sum(h * obj_emb + bias, -1); sum(bias) precomputed into an SMEM scalar.
    obj = obj_ref[...].astype(jnp.float32)                       # (#4) bf16 stream ok
    out_ref[...] = jnp.sum(h * obj, axis=-1, keepdims=True) + bsum_ref[0]


def _bn_fold(gamma, beta, mean, var, eps=1e-5):
    s = gamma / jnp.sqrt(var + eps)
    return s, beta - mean * s


def _round_up(x, m):
    return (x + m - 1) // m * m


def _choose_tb(batch, block_b):
    """Rows per grid step: multiple of 8 (sublane), at most block_b, and >= 2 grid
    steps (even count) whenever the batch allows, so v7x's two TensorCores both
    get work from the "parallel" batch axis (#1, #3)."""
    block_b = max(8, (block_b // 8) * 8)
    if batch <= 8:
        return 8
    n_steps = max(2, pl.cdiv(batch, block_b))
    n_steps = _round_up(n_steps, 2)
    return min(block_b, _round_up(pl.cdiv(batch, n_steps), 8))


def _im2col_fold_weight(conv_w, H, W, HO, WO, KS):
    """W_fold of shape (H*W, F*HO*WO) with column order f*P + (ho*WO + wo),
    such that img_flat @ W_fold == conv2d(img) flattened PyTorch-style (NCHW)."""
    F = conv_w.shape[0]
    w = conv_w.reshape(F, KS, KS)
    hh = np.arange(H)[:, None, None, None]
    ww = np.arange(W)[None, :, None, None]
    ho = np.arange(HO)[None, None, :, None]
    wo = np.arange(WO)[None, None, None, :]
    ki = hh - ho
    kj = ww - wo
    valid = (ki >= 0) & (ki < KS) & (kj >= 0) & (kj < KS)         # (H, W, HO, WO)
    ki_b = np.broadcast_to(np.clip(ki, 0, KS - 1), valid.shape)
    kj_b = np.broadcast_to(np.clip(kj, 0, KS - 1), valid.shape)
    tap = w[:, ki_b, kj_b] * jnp.asarray(valid, w.dtype)          # (F, H, W, HO, WO)
    return jnp.transpose(tap, (1, 2, 0, 3, 4)).reshape(H * W, F * HO * WO)


def conve_forward(sub_emb, obj_emb, rel_emb, params, *, k_w, kernel_size,
                  num_filter, block_b=2048):
    B, dim = sub_emb.shape
    assert dim % k_w == 0
    k_h = dim // k_w
    H, W = 2 * k_w, k_h
    KS = kernel_size
    HO, WO = H - KS + 1, W - KS + 1
    P, F = HO * WO, num_filter
    PF = P * F
    PFpad = _round_up(PF, 128)          # (#8) lane-dense z / conv-output columns
    Dpad = _round_up(dim, 128)          # (#6) lane-aligned halves of the conv LHS
    Kpad = 2 * Dpad                     # same MXU K-granule count as the raw 2*dim

    # ---- fold bn0/bn1 into (wc, cb), bn2 into (wr, fcb), im2col into wc ----
    # NOTE: the bn0 shift fold (t0 * column sums of Wf) is only valid for this
    # VALID-padded, stride-1 conv where every output position sees all KSxKS taps.
    s0, t0 = _bn_fold(params["bn0_g"], params["bn0_b"],
                      params["bn0_m"], params["bn0_v"])
    s1, t1 = _bn_fold(params["bn1_g"], params["bn1_b"],
                      params["bn1_m"], params["bn1_v"])
    s2, t2 = _bn_fold(params["bn2_g"], params["bn2_b"],
                      params["bn2_m"], params["bn2_v"])

    Wf = _im2col_fold_weight(params["conv_w"], H, W, HO, WO, KS)  # (2*dim, PF),
    #                                               rows in interleaved order 2*d + s
    s1r = jnp.repeat(s1, P)                                       # col = f*P + p
    t1r = jnp.repeat(t1, P)
    cbr = jnp.repeat(params["conv_b"], P)
    wc_i = Wf * (s0[0] * s1r)[None, :]                            # (2*dim, PF)
    cb = s1r * (t0[0] * jnp.sum(Wf, axis=0) + cbr) + t1r          # (PF,)

    # (#6) Fold the sub/rel interleave into the weight rows: LHS row layout is
    # [sub (cols 0:dim) | zeros | rel (cols Dpad:Dpad+dim) | zeros], so scatter the
    # interleaved rows (sub -> even, rel -> odd) into the matching row blocks.
    wc = jnp.zeros((Kpad, PFpad), jnp.float32)
    wc = wc.at[:dim, :PF].set(wc_i[0::2])                         # sub rows (j = 2d)
    wc = wc.at[Dpad:Dpad + dim, :PF].set(wc_i[1::2])              # rel rows (j = 2d+1)
    cb_p = jnp.zeros((PFpad,), jnp.float32).at[:PF].set(cb)

    wr = jnp.zeros((PFpad, dim), jnp.float32).at[:PF, :].set(
        params["fc_w"].T * s2[None, :])                           # (PFpad, dim)
    fcb = params["fc_b"] * s2 + t2                                # (dim,)
    bias_sum = jnp.sum(params["bias"]).reshape(1).astype(jnp.float32)

    # ---- batch tiling: no host-side padding / copies of the per-batch tensors (#5);
    # a non-dividing last block is handled by Pallas (masked reads/writes). ----
    TB = _choose_tb(B, block_b)
    n_steps = pl.cdiv(B, TB)

    out = pl.pallas_call(
        conve_kernel,
        out_shape=jax.ShapeDtypeStruct((B, 1), jnp.float32),
        grid=(n_steps,),
        in_specs=[
            pl.BlockSpec((TB, dim), lambda i: (i, 0)),        # sub rows (any dtype)
            pl.BlockSpec((TB, dim), lambda i: (i, 0)),        # rel rows
            pl.BlockSpec((TB, dim), lambda i: (i, 0)),        # obj rows
            pl.BlockSpec((Kpad, PFpad), lambda i: (0, 0)),    # folded conv weight
            pl.BlockSpec((1, PFpad), lambda i: (0, 0)),       # folded conv/bn bias
            pl.BlockSpec((PFpad, dim), lambda i: (0, 0)),     # folded fc weight
            pl.BlockSpec((1, dim), lambda i: (0, 0)),         # folded fc/bn bias
            pl.BlockSpec(memory_space=pltpu.MemorySpace.SMEM),  # sum(bias) scalar
        ],
        out_specs=pl.BlockSpec((TB, 1), lambda i: (i, 0)),
        scratch_shapes=[pltpu.VMEM((TB, Kpad), jnp.bfloat16)],  # assembled conv LHS
        compiler_params=pltpu.CompilerParams(
            dimension_semantics=("parallel",),
            # (#2) v5e's default scoped VMEM (16 MiB) is too small once TB >= ~1024;
            # 32 MiB covers TB=2048 comfortably and is within v7x's 64 MiB physical.
            vmem_limit_bytes=32 * 1024 * 1024),
    )(sub_emb, rel_emb, obj_emb,
      wc.astype(jnp.bfloat16), cb_p.reshape(1, PFpad),
      wr.astype(jnp.bfloat16), fcb.reshape(1, dim).astype(jnp.float32),
      bias_sum)
    return out[:, 0]


def conve_reference(sub_emb, obj_emb, rel_emb, params, *, k_w, kernel_size,
                    num_filter):
    """Pure-JAX reference replicating the PyTorch eval-mode forward (f32)."""
    B, dim = sub_emb.shape
    k_h = dim // k_w
    s0, t0 = _bn_fold(params["bn0_g"], params["bn0_b"],
                      params["bn0_m"], params["bn0_v"])
    s1, t1 = _bn_fold(params["bn1_g"], params["bn1_b"],
                      params["bn1_m"], params["bn1_v"])
    s2, t2 = _bn_fold(params["bn2_g"], params["bn2_b"],
                      params["bn2_m"], params["bn2_v"])

    img = jnp.stack([sub_emb, rel_emb], axis=-1).reshape(B, 1, 2 * k_w, k_h)
    x = img * s0 + t0
    y = jax.lax.conv_general_dilated(
        x, params["conv_w"], window_strides=(1, 1), padding="VALID",
        dimension_numbers=("NCHW", "OIHW", "NCHW"),
        precision=jax.lax.Precision.HIGHEST)
    y = y + params["conv_b"][None, :, None, None]
    y = jnp.maximum(y * s1[None, :, None, None] + t1[None, :, None, None], 0.0)
    hflat = y.reshape(B, -1)
    h = jnp.dot(hflat, params["fc_w"].T,
                precision=jax.lax.Precision.HIGHEST) + params["fc_b"]
    h = jnp.maximum(h * s2 + t2, 0.0)
    return jnp.sum(h * obj_emb + params["bias"], axis=-1)


if __name__ == "__main__":
    B, dim, k_w, F, KS = 32, 80, 10, 20, 7
    k_h = dim // k_w                                     # 8
    flat_size = (2 * k_w - KS + 1) * (k_h - KS + 1) * F  # 14 * 2 * 20 = 560

    key = jax.random.PRNGKey(0)
    ks = jax.random.split(key, 20)
    # Embeddings arrive already in bf16 (review #4); the kernel streams them as-is
    # (no host-side cast / pad / interleave materialization, review #5/#6).
    sub = jax.random.normal(ks[0], (B, dim), jnp.float32).astype(jnp.bfloat16)
    obj = jax.random.normal(ks[1], (B, dim), jnp.float32).astype(jnp.bfloat16)
    rel = jax.random.normal(ks[2], (B, dim), jnp.float32).astype(jnp.bfloat16)

    params = dict(
        conv_w=jax.random.normal(ks[3], (F, 1, KS, KS), jnp.float32) / KS,
        conv_b=jax.random.normal(ks[4], (F,), jnp.float32) * 0.1,
        fc_w=jax.random.normal(ks[5], (dim, flat_size), jnp.float32)
        / np.sqrt(flat_size),
        fc_b=jax.random.normal(ks[6], (dim,), jnp.float32) * 0.1,
        bias=jnp.zeros((dim,), jnp.float32),             # nn.Parameter(zeros(dim))
        bn0_g=1.0 + 0.1 * jax.random.normal(ks[7], (1,), jnp.float32),
        bn0_b=0.1 * jax.random.normal(ks[8], (1,), jnp.float32),
        bn0_m=0.1 * jax.random.normal(ks[9], (1,), jnp.float32),
        bn0_v=jax.random.uniform(ks[10], (1,), jnp.float32, 0.5, 1.5),
        bn1_g=1.0 + 0.1 * jax.random.normal(ks[11], (F,), jnp.float32),
        bn1_b=0.1 * jax.random.normal(ks[12], (F,), jnp.float32),
        bn1_m=0.1 * jax.random.normal(ks[13], (F,), jnp.float32),
        bn1_v=jax.random.uniform(ks[14], (F,), jnp.float32, 0.5, 1.5),
        bn2_g=1.0 + 0.1 * jax.random.normal(ks[15], (dim,), jnp.float32),
        bn2_b=0.1 * jax.random.normal(ks[16], (dim,), jnp.float32),
        bn2_m=0.1 * jax.random.normal(ks[17], (dim,), jnp.float32),
        bn2_v=jax.random.uniform(ks[18], (dim,), jnp.float32, 0.5, 1.5),
    )

    run = functools.partial(conve_forward, k_w=k_w, kernel_size=KS,
                            num_filter=F)
    out = jax.block_until_ready(run(sub, obj, rel, params))

    # Reference gets the same bf16-rounded inputs, computed in f32 HIGHEST precision;
    # tolerance sized for the two bf16 MXU contractions + the 80-term f32 reduction.
    ref = conve_reference(sub.astype(jnp.float32), obj.astype(jnp.float32),
                          rel.astype(jnp.float32), params,
                          k_w=k_w, kernel_size=KS, num_filter=F)
    np.testing.assert_allclose(np.asarray(out), np.asarray(ref),
                               rtol=2e-2, atol=2e-1)
    print("KERNEL_OK")
</pallas_src>

<mosaic_0001>
module attributes {stable_mosaic.version = 11 : i64} {
  func.func @conve_kernel(%arg0: i32, %arg1: memref<16x80xbf16, #tpu.memory_space<vmem>>, %arg2: memref<16x80xbf16, #tpu.memory_space<vmem>>, %arg3: memref<16x80xbf16, #tpu.memory_space<vmem>>, %arg4: memref<256x640xbf16, #tpu.memory_space<vmem>>, %arg5: memref<1x640xf32, #tpu.memory_space<vmem>>, %arg6: memref<640x80xbf16, #tpu.memory_space<vmem>>, %arg7: memref<1x80xf32, #tpu.memory_space<vmem>>, %arg8: memref<1xf32, #tpu.memory_space<smem>>, %arg9: memref<16x1xf32, #tpu.memory_space<vmem>>, %arg10: memref<16x256xbf16, #tpu.memory_space<vmem>>) attributes {dimension_semantics = [#tpu.dimension_semantics<parallel>], iteration_bounds = array<i64: 2>, scalar_prefetch = 0 : i64, scratch_operands = 1 : i64, tpu.core_type = #tpu.core_type<tc>, window_params = [{transform_indices = @transform_0, window_bounds = array<i64: 16, 80>}, {transform_indices = @transform_1, window_bounds = array<i64: 16, 80>}, {transform_indices = @transform_2, window_bounds = array<i64: 16, 80>}, {pipeline_mode = #tpu.pipeline_mode<synchronous>, transform_indices = @transform_3, window_bounds = array<i64: 256, 640>}, {pipeline_mode = #tpu.pipeline_mode<synchronous>, transform_indices = @transform_4, window_bounds = array<i64: 1, 640>}, {pipeline_mode = #tpu.pipeline_mode<synchronous>, transform_indices = @transform_5, window_bounds = array<i64: 640, 80>}, {pipeline_mode = #tpu.pipeline_mode<synchronous>, transform_indices = @transform_6, window_bounds = array<i64: 1, 80>}, {transform_indices = @transform_7, window_bounds = array<i64: 1>}, {transform_indices = @transform_8, window_bounds = array<i64: 16, 1>}]} {
    %cst = arith.constant 0.000000e+00 : bf16
    %0 = vector.broadcast %cst : bf16 to vector<16x256xbf16>
    %c0 = arith.constant 0 : index
    %c0_0 = arith.constant 0 : index
    %1 = vector.load %arg10[%c0, %c0_0] : memref<16x256xbf16, #tpu.memory_space<vmem>>, vector<16x256xbf16>
    tpu.vector_store %arg10[%c0, %c0_0], %0 {strides = array<i32>} : memref<16x256xbf16, #tpu.memory_space<vmem>>, vector<16x256xbf16>,
    %c0_1 = arith.constant 0 : index
    %c0_2 = arith.constant 0 : index
    %2 = vector.load %arg1[%c0_1, %c0_2] : memref<16x80xbf16, #tpu.memory_space<vmem>>, vector<16x80xbf16>
    %c0_3 = arith.constant 0 : index
    %c0_4 = arith.constant 0 : index
    %3 = vector.load %arg10[%c0_3, %c0_4] : memref<16x256xbf16, #tpu.memory_space<vmem>>, vector<16x80xbf16>
    tpu.vector_store %arg10[%c0_3, %c0_4], %2 {strides = array<i32>} : memref<16x256xbf16, #tpu.memory_space<vmem>>, vector<16x80xbf16>,
    %c0_5 = arith.constant 0 : index
    %c0_6 = arith.constant 0 : index
    %4 = vector.load %arg2[%c0_5, %c0_6] : memref<16x80xbf16, #tpu.memory_space<vmem>>, vector<16x80xbf16>
    %c0_7 = arith.constant 0 : index
    %c128 = arith.constant 128 : index
    %5 = vector.load %arg10[%c0_7, %c128] : memref<16x256xbf16, #tpu.memory_space<vmem>>, vector<16x80xbf16>
    tpu.vector_store %arg10[%c0_7, %c128], %4 {strides = array<i32>} : memref<16x256xbf16, #tpu.memory_space<vmem>>, vector<16x80xbf16>,
    %c0_8 = arith.constant 0 : index
    %c0_9 = arith.constant 0 : index
    %6 = vector.load %arg10[%c0_8, %c0_9] : memref<16x256xbf16, #tpu.memory_space<vmem>>, vector<16x256xbf16>
    %c0_10 = arith.constant 0 : index
    %c0_11 = arith.constant 0 : index
    %7 = vector.load %arg4[%c0_10, %c0_11] : memref<256x640xbf16, #tpu.memory_space<vmem>>, vector<256x640xbf16>
    %cst_12 = arith.constant dense<0.000000e+00> : vector<16x640xf32>
    %8 = tpu.matmul %6, %7, %cst_12 {dimension_numbers = #tpu.dot_dimension_numbers<[1], [0], [0], [1], [0, 0, 1, 1], [], []>} : vector<16x256xbf16>, vector<256x640xbf16>, vector<16x640xf32> -> vector<16x640xf32>
    %c0_13 = arith.constant 0 : index
    %c0_14 = arith.constant 0 : index
    %9 = vector.load %arg5[%c0_13, %c0_14] : memref<1x640xf32, #tpu.memory_space<vmem>>, vector<1x640xf32>
    %10 = vector.broadcast %9 : vector<1x640xf32> to vector<16x640xf32>
    %11 = arith.addf %8, %10 : vector<16x640xf32>
    %cst_15 = arith.constant 0.000000e+00 : f32
    %12 = vector.broadcast %cst_15 : f32 to vector<16x640xf32>
    %13 = arith.maximumf %11, %12 : vector<16x640xf32>
    %14 = arith.truncf %13 : vector<16x640xf32> to vector<16x640xbf16>
    %c0_16 = arith.constant 0 : index
    %c0_17 = arith.constant 0 : index
    %15 = vector.load %arg6[%c0_16, %c0_17] : memref<640x80xbf16, #tpu.memory_space<vmem>>, vector<640x80xbf16>
    %cst_18 = arith.constant dense<0.000000e+00> : vector<16x80xf32>
    %16 = tpu.matmul %14, %15, %cst_18 {dimension_numbers = #tpu.dot_dimension_numbers<[1], [0], [0], [1], [0, 0, 1, 1], [], []>} : vector<16x640xbf16>, vector<640x80xbf16>, vector<16x80xf32> -> vector<16x80xf32>
    %c0_19 = arith.constant 0 : index
    %c0_20 = arith.constant 0 : index
    %17 = vector.load %arg7[%c0_19, %c0_20] : memref<1x80xf32, #tpu.memory_space<vmem>>, vector<1x80xf32>
    %18 = vector.broadcast %17 : vector<1x80xf32> to vector<16x80xf32>
    %19 = arith.addf %16, %18 : vector<16x80xf32>
    %cst_21 = arith.constant 0.000000e+00 : f32
    %20 = vector.broadcast %cst_21 : f32 to vector<16x80xf32>
    %21 = arith.maximumf %19, %20 : vector<16x80xf32>
    %c0_22 = arith.constant 0 : index
    %c0_23 = arith.constant 0 : index
    %22 = vector.load %arg3[%c0_22, %c0_23] : memref<16x80xbf16, #tpu.memory_space<vmem>>, vector<16x80xbf16>
    %23 = arith.extf %22 : vector<16x80xbf16> to vector<16x80xf32>
    %24 = arith.mulf %21, %23 : vector<16x80xf32>
    %cst_24 = arith.constant dense<0.000000e+00> : vector<16xf32>
    %25 = vector.multi_reduction <add>, %24, %cst_24 [1] : vector<16x80xf32> to vector<16xf32>
    %26 = vector.shape_cast %25 : vector<16xf32> to vector<16x1xf32>
    %c0_25 = arith.constant 0 : index
    %27 = memref.load %arg8[%c0_25] : memref<1xf32, #tpu.memory_space<smem>>
    %28 = vector.broadcast %27 : f32 to vector<16x1xf32>
    %29 = arith.addf %26, %28 : vector<16x1xf32>
    %c0_26 = arith.constant 0 : index
    %c0_27 = arith.constant 0 : index
    %30 = vector.load %arg9[%c0_26, %c0_27] : memref<16x1xf32, #tpu.memory_space<vmem>>, vector<16x1xf32>
    tpu.vector_store %arg9[%c0_26, %c0_27], %29 {strides = array<i32>} : memref<16x1xf32, #tpu.memory_space<vmem>>, vector<16x1xf32>,
    return
  }
  func.func @transform_0(%arg0: i32) -> (i32, i32) {
    %c0_i32 = arith.constant 0 : i32
    %c0_i32_0 = arith.constant 0 : i32
    return %arg0, %c0_i32 : i32, i32
  }
  func.func @transform_1(%arg0: i32) -> (i32, i32) {
    %c0_i32 = arith.constant 0 : i32
    %c0_i32_0 = arith.constant 0 : i32
    return %arg0, %c0_i32 : i32, i32
  }
  func.func @transform_2(%arg0: i32) -> (i32, i32) {
    %c0_i32 = arith.constant 0 : i32
    %c0_i32_0 = arith.constant 0 : i32
    return %arg0, %c0_i32 : i32, i32
  }
  func.func @transform_3(%arg0: i32) -> (i32, i32) {
    %c0_i32 = arith.constant 0 : i32
    %c0_i32_0 = arith.constant 0 : i32
    %c0_i32_1 = arith.constant 0 : i32
    return %c0_i32, %c0_i32_0 : i32, i32
  }
  func.func @transform_4(%arg0: i32) -> (i32, i32) {
    %c0_i32 = arith.constant 0 : i32
    %c0_i32_0 = arith.constant 0 : i32
    %c0_i32_1 = arith.constant 0 : i32
    return %c0_i32, %c0_i32_0 : i32, i32
  }
  func.func @transform_5(%arg0: i32) -> (i32, i32) {
    %c0_i32 = arith.constant 0 : i32
    %c0_i32_0 = arith.constant 0 : i32
    %c0_i32_1 = arith.constant 0 : i32
    return %c0_i32, %c0_i32_0 : i32, i32
  }
  func.func @transform_6(%arg0: i32) -> (i32, i32) {
    %c0_i32 = arith.constant 0 : i32
    %c0_i32_0 = arith.constant 0 : i32
    %c0_i32_1 = arith.constant 0 : i32
    return %c0_i32, %c0_i32_0 : i32, i32
  }
  func.func @transform_7(%arg0: i32) -> i32 {
    %c0_i32 = arith.constant 0 : i32
    %c0_i32_0 = arith.constant 0 : i32
    return %c0_i32 : i32
  }
  func.func @transform_8(%arg0: i32) -> (i32, i32) {
    %c0_i32 = arith.constant 0 : i32
    %c0_i32_0 = arith.constant 0 : i32
    return %arg0, %c0_i32 : i32, i32
  }
}

</mosaic_0001>

<bundles_post_ra>
// kernel: tpu_custom_call.1
= control target key start
LH: loop header
LB: loop body
LE: loop exit
PB: predicated region body
PF: predicated region fallthrough
CT: control target
= control target key end

     0   :  { %s2524_s0 = inlined_call_operand.vmem [shape: bf16[32,80], index: 0, kind: input, shape index: {}]   ;;  %s2525_s1 = inlined_call_operand.vmem [shape: bf16[32,80], index: 1, kind: input, shape index: {}]   ;;  %s2526_s2 = inlined_call_operand.vmem [shape: bf16[32,80], index: 2, kind: input, shape index: {}]   ;;  %s2527_s3 = inlined_call_operand.hbm [shape: bf16[256,640], index: 3, kind: input, shape index: {}]   ;;  %s2528_s4 = inlined_call_operand.vmem [shape: f32[1,640], index: 4, kind: input, shape index: {}]   ;;  %s2529_s5 = inlined_call_operand.vmem [shape: bf16[640,80], index: 5, kind: input, shape index: {}]   ;;  %s2530_s6 = inlined_call_operand.vmem [shape: f32[1,80], index: 6, kind: input, shape index: {}]   ;;  %s2531_s7 = inlined_call_operand.<no memory space> [shape: f32[1], index: 7, kind: input, shape index: {}]   ;;  %s2532_s8 = inlined_call_operand.vmem [shape: f32[32,1], index: 8, kind: output, shape index: {}]  }
   0x1   :  { %13 = sst [smem:[#allocation3]] %s2531_s7 }
   0x2   :  { %14 = vsyncpa [#allocation5], 0  ;;  %s2330_s29 = smov 0  }
   0x3 LB: > { %s245_s10 = sshll.u32 %s2527_s3, 4  ;;  %s1582_s11 = sadd.s32 4294967295, %s2276_s29   ;;  %s2276_s29 = sphi %s2330_s29, %s20_s29   ;;  %s246_s10 = int_to_ptr.hbm [resolvable:$true] %s245_s10 }
   0x4   : > { %p1584_p0 = scmp.ge.s32.totalorder %s2276_s29, 1  ;;  %p234_p1 = scmp.lt.s32.totalorder %s2276_s29, 3 }
   0x5   : > { %p2221_p2 = scmp.eq.s32.totalorder %s1582_s11, 0  ;;  %s2278_s7 = smov [#allocation4]  }
   0x6   : > { %p235_p3 = pnand %p1584_p0, %p234_p1  ;;  %s247_s12 = sshll.u32 %s2278_s7, 4  ;;  %s248_s12 = int_to_ptr.vmem [resolvable:$true] %s247_s12 }
   0x7   : > { %s2279_s13 = smov 320   ;;  %s2280_s14 = smov 20  }
   0x8   : > { %p2217_p4 = pneg %p235_p3  ;;  %302 = sbr.rel (%p235_p3) target bundleno = 521 (0x209), region = 52 }
   0xa   : > { %p2218_p5 = pnand %p2221_p2, %p2217_p4 }
   0xc   : > { %2220 = dma.hbm_to_vmem [thread:$0]  (!%p2218_p5), %s246_s10, 10240, %s248_s12, [#allocation5], %s2279_s13, %s2279_s13, %s2280_s14  }
   0xd   : > { %2271 = dma.done.wait (%p2221_p2), [#allocation5], 10240  }
   0xe   : > { %2273 = vsyncadd (%p2221_p2), [#allocation5], 4294957056  ;;  %s2341_s15 = sshll.u32 %s1582_s11, 1  ;;  %v2281_v0 = vmov 0   ;;  %v1747_v1 = vld [vmem:[#allocation4 + $0x118] sm:$0xf] }
   0xf   : > { %372 = vst [vmem:[#allocation2] sm:$0xff] %v2281_v0  ;;  %v2126_v2 = vld [vmem:[#allocation4 + $0x128] sm:$0xf0]  ;;  %v1907_v3 = vld [vmem:[#allocation4 + $0x258] sm:$0xf]  ;;  %p348_p6 = scmp.lt.s32.totalorder %s2341_s15, 3 }
  0x10   : > { %v1748_v4 = vor.u32 %v2126_v2, %v1747_v1  ;;  %v2166_v5 = vld [vmem:[#allocation4 + $0x268] sm:$0xf0]  ;;  %v2124_v6 = vld [vmem:[#allocation4 + $0x11c] sm:$0xf]  ;;  %v1749_v7 = vld [vmem:[#allocation4 + $0x12c] sm:$0xf0] }
  0x11   : > { %v1908_v8 = vor.u32 %v2166_v5, %v1907_v3  ;;  %v1752_v9 = vor.u32 %v2124_v6, %v1749_v7  ;;  %v2164_v10 = vld [vmem:[#allocation4 + $0x25c] sm:$0xf]  ;;  %v1909_v11 = vld [vmem:[#allocation4 + $0x26c] sm:$0xf0]  ;;  %v2121_v14 = vld [vmem:[#allocation4 + $0x100] sm:$0xf0] }
  0x12   : > { %v1727_v12 = vld [vmem:[#allocation4 + $0xf0] sm:$0xf]  ;;  %919 = vmatpush.bf16.msra.mxu0 %v1748_v4  ;;  %v1912_v13 = vor.u32 %v2164_v10, %v1909_v11  ;;  %v2161_v16 = vld [vmem:[#allocation4 + $0x240] sm:$0xf0]  ;;  %v2119_v19 = vld [vmem:[#allocation4 + $0xf4] sm:$0xf] }
  0x13   : > { %v1887_v15 = vld [vmem:[#allocation4 + $0x230] sm:$0xf]  ;;  %933 = vmatpush.bf16.msra.mxu1 %v1908_v8  ;;  %947 = vmatpush.bf16.msra.mxu2 %v1752_v9  ;;  %v1728_v17 = vor.u32 %v2121_v14, %v1727_v12  ;;  %v1729_v20 = vld [vmem:[#allocation4 + $0x104] sm:$0xf0]  ;;  %v2159_v21 = vld [vmem:[#allocation4 + $0x234] sm:$0xf] }
  0x14   : > { %v1888_v18 = vor.u32 %v2161_v16, %v1887_v15  ;;  %961 = vmatpush.bf16.msra.mxu3 %v1912_v13  ;;  %v1732_v22 = vor.u32 %v2119_v19, %v1729_v20  ;;  %v1889_v23 = vld [vmem:[#allocation4 + $0x244] sm:$0xf0]  ;;  %v2116_v25 = vld [vmem:[#allocation4 + $0xd8] sm:$0xf0]  ;;  %v2114_v29 = vld [vmem:[#allocation4 + $0xcc] sm:$0xf] }
  0x15   : > { %v1707_v24 = vld [vmem:[#allocation4 + $0xc8] sm:$0xf]  ;;  %v1892_v26 = vor.u32 %v2159_v21, %v1889_v23  ;;  %v2156_v28 = vld [vmem:[#allocation4 + $0x218] sm:$0xf0]  ;;  %v1709_v31 = vld [vmem:[#allocation4 + $0xdc] sm:$0xf0] }
  0x16   : > { %v1867_v27 = vld [vmem:[#allocation4 + $0x208] sm:$0xf]  ;;  %920 = vmatpush.bf16.msra.mxu0 %v1728_v17  ;;  %v1708_v30 = vor.u32 %v2116_v25, %v1707_v24  ;;  %v2154_v32 = vld [vmem:[#allocation4 + $0x20c] sm:$0xf]  ;;  %v1869_v33 = vld [vmem:[#allocation4 + $0x21c] sm:$0xf0]  ;;  %v1712_v35 = vor.u32 %v2114_v29, %v1709_v31 }
  0x17   : > { %934 = vmatpush.bf16.msra.mxu1 %v1888_v18  ;;  %948 = vmatpush.bf16.msra.mxu2 %v1732_v22  ;;  %v1868_v34 = vor.u32 %v2156_v28, %v1867_v27  ;;  %v1687_v36 = vld [vmem:[#allocation4 + $0xa0] sm:$0xf]  ;;  %v2111_v37 = vld [vmem:[#allocation4 + $0xb0] sm:$0xf0]  ;;  %v1872_v39 = vor.u32 %v2154_v32, %v1869_v33  ;;  %v2109_v41 = vld [vmem:[#allocation4 + $0xa4] sm:$0xf] }
  0x18   : > { %v1847_v38 = vld [vmem:[#allocation4 + $0x1e0] sm:$0xf]  ;;  %962 = vmatpush.bf16.msra.mxu3 %v1892_v26  ;;  %v2151_v40 = vld [vmem:[#allocation4 + $0x1f0] sm:$0xf0]  ;;  %v1689_v42 = vld [vmem:[#allocation4 + $0xb4] sm:$0xf0]  ;;  %v1688_v45 = vor.u32 %v2111_v37, %v1687_v36 }
  0x19   : > { %v2149_v43 = vld [vmem:[#allocation4 + $0x1e4] sm:$0xf]  ;;  %v1849_v44 = vld [vmem:[#allocation4 + $0x1f4] sm:$0xf0]  ;;  %v1848_v46 = vor.u32 %v2151_v40, %v1847_v38  ;;  %v1692_v47 = vor.u32 %v2109_v41, %v1689_v42  ;;  %v2106_v49 = vld [vmem:[#allocation4 + $0x88] sm:$0xf0] }
  0x1a   : > { %921 = vmatpush.bf16.msra.mxu0 %v1708_v30  ;;  %v1667_v48 = vld [vmem:[#allocation4 + $0x78] sm:$0xf]  ;;  %v1852_v51 = vor.u32 %v2149_v43, %v1849_v44  ;;  %v2146_v52 = vld [vmem:[#allocation4 + $0x1c8] sm:$0xf0]  ;;  %v2104_v53 = vld [vmem:[#allocation4 + $0x7c] sm:$0xf] }
  0x1b   : > { %935 = vmatpush.bf16.msra.mxu1 %v1868_v34  ;;  %949 = vmatpush.bf16.msra.mxu2 %v1712_v35  ;;  %v1827_v50 = vld [vmem:[#allocation4 + $0x1b8] sm:$0xf]  ;;  %v1669_v54 = vld [vmem:[#allocation4 + $0x8c] sm:$0xf0]  ;;  %v2144_v55 = vld [vmem:[#allocation4 + $0x1bc] sm:$0xf]  ;;  %v1668_v57 = vor.u32 %v2106_v49, %v1667_v48 }
  0x1c   : > { %963 = vmatpush.bf16.msra.mxu3 %v1872_v39  ;;  %v1829_v56 = vld [vmem:[#allocation4 + $0x1cc] sm:$0xf0]  ;;  %s2534_s15 = smov (!%p348_p6, %s2341_s15), 3  ;;  %v1828_v58 = vor.u32 %v2146_v52, %v1827_v50  ;;  %v1672_v59 = vor.u32 %v2104_v53, %v1669_v54  ;;  %v2101_v61 = vld [vmem:[#allocation4 + $0x60] sm:$0xf0]  ;;  %vm376_vm0 = vcmask 650240  }
  0x1d   : > { %v1647_v60 = vld [vmem:[#allocation4 + $0x50] sm:$0xf]  ;;  %v1832_v63 = vor.u32 %v2144_v55, %v1829_v56  ;;  %v2141_v1 = vld [vmem:[#allocation4 + $0x1a0] sm:$0xf0]  ;;  %v2099_v2 = vld [vmem:[#allocation4 + $0x54] sm:$0xf] }
  0x1e   : > { %922 = vmatpush.bf16.msra.mxu0 %v1688_v45  ;;  %v1807_v62 = vld [vmem:[#allocation4 + $0x190] sm:$0xf]  ;;  %v1649_v3 = vld [vmem:[#allocation4 + $0x64] sm:$0xf0]  ;;  %v2139_v4 = vld [vmem:[#allocation4 + $0x194] sm:$0xf]  ;;  %v1648_v6 = vor.u32 %v2101_v61, %v1647_v60 }
  0x1f   : > { %936 = vmatpush.bf16.msra.mxu1 %v1848_v46  ;;  %950 = vmatpush.bf16.msra.mxu2 %v1692_v47  ;;  %v1809_v5 = vld [vmem:[#allocation4 + $0x1a4] sm:$0xf0]  ;;  %s2351_s16 = sshll.u32 %s2534_s15, 2  ;;  %v1808_v8 = vor.u32 %v2141_v1, %v1807_v62  ;;  %v1652_v9 = vor.u32 %v2099_v2, %v1649_v3  ;;  %v2096_v10 = vld [vmem:[#allocation4 + $0x38] sm:$0xf0]  ;;  %373 = vst [vmem:[#allocation2 + $0x8] sm:$0xff] %v2281_v0 }
  0x20   : > { %964 = vmatpush.bf16.msra.mxu3 %v1852_v51  ;;  %v1627_v7 = vld [vmem:[#allocation4 + $0x28] sm:$0xf]  ;;  %v2136_v12 = vld [vmem:[#allocation4 + $0x178] sm:$0xf0]  ;;  %v1812_v13 = vor.u32 %v2139_v4, %v1809_v5  ;;  %v2094_v14 = vld [vmem:[#allocation4 + $0x2c] sm:$0xf]  ;;  %s351_s19 = scalar_lea.vmem %s2524_s0, %s2351_s16  ;;  %s357_s22 = scalar_lea.vmem %s2525_s1, %s2351_s16 }
  0x21   : > { %v1787_v11 = vld [vmem:[#allocation4 + $0x168] sm:$0xf]  ;;  %v1629_v15 = vld [vmem:[#allocation4 + $0x3c] sm:$0xf0]  ;;  %v2134_v16 = vld [vmem:[#allocation4 + $0x16c] sm:$0xf]  ;;  %v1628_v20 = vor.u32 %v2096_v10, %v1627_v7  ;;  %s363_s30 = scalar_lea.vmem %s2526_s2, %s2351_s16 }
  0x22   : > { %923 = vmatpush.bf16.msra.mxu0 %v1668_v57  ;;  %v1789_v17 = vld [vmem:[#allocation4 + $0x17c] sm:$0xf0]  ;;  %v2091_v19 = vld [vmem:[#allocation4 + $0x10] sm:$0xf0]  ;;  %v2089_v23 = vld [vmem:[#allocation4 + $0x4] sm:$0xf]  ;;  %v1788_v25 = vor.u32 %v2136_v12, %v1787_v11  ;;  %v1632_v26 = vor.u32 %v2094_v14, %v1629_v15 }
  0x23   : > { %937 = vmatpush.bf16.msra.mxu1 %v1828_v58  ;;  %951 = vmatpush.bf16.msra.mxu2 %v1672_v59  ;;  %v1607_v18 = vld [vmem:[#allocation4] sm:$0xf]  ;;  %v2131_v22 = vld [vmem:[#allocation4 + $0x150] sm:$0xf0]  ;;  %v1609_v24 = vld [vmem:[#allocation4 + $0x14] sm:$0xf0]  ;;  %v1792_v30 = vor.u32 %v2134_v16, %v1789_v17 }
  0x24   : > { %965 = vmatpush.bf16.msra.mxu3 %v1832_v63  ;;  %v1767_v21 = vld [vmem:[#allocation4 + $0x140] sm:$0xf]  ;;  %v2127_v28 = vld [vmem:[#allocation4 + $0x130] sm:$0xf0]  ;;  %v2125_v32 = vld [vmem:[#allocation4 + $0x124] sm:$0xf]  ;;  %v1608_v36 = vor.u32 %v2091_v19, %v1607_v18  ;;  %v1612_v41 = vor.u32 %v2089_v23, %v1609_v24 }
  0x25   : > { %v1755_v27 = vld [vmem:[#allocation4 + $0x120] sm:$0xf]  ;;  %v2167_v31 = vld [vmem:[#allocation4 + $0x270] sm:$0xf0]  ;;  %v1757_v33 = vld [vmem:[#allocation4 + $0x134] sm:$0xf0]  ;;  %v1768_v40 = vor.u32 %v2131_v22, %v1767_v21 }
  0x26   : > { %924 = vmatpush.bf16.msra.mxu0 %v1648_v6  ;;  %v1915_v29 = vld [vmem:[#allocation4 + $0x260] sm:$0xf]  ;;  %v2129_v34 = vld [vmem:[#allocation4 + $0x144] sm:$0xf]  ;;  %v1769_v35 = vld [vmem:[#allocation4 + $0x154] sm:$0xf0]  ;;  %v1756_v44 = vor.u32 %v2127_v28, %v1755_v27  ;;  %v1760_v47 = vor.u32 %v2125_v32, %v1757_v33 }
  0x27   : > { %938 = vmatpush.bf16.msra.mxu1 %v1808_v8  ;;  %952 = vmatpush.bf16.msra.mxu2 %v1652_v9  ;;  %v2165_v37 = vld [vmem:[#allocation4 + $0x264] sm:$0xf]  ;;  %v374_v38 = vld [vmem:[%s351_s19] sm:$0xf]  ;;  %v375_v39 = vld [vmem:[%s351_s19 + $0x4] sm:$0xf]  ;;  %v1916_v0 = vor.u32 %v2167_v31, %v1915_v29  ;;  %v1772_v48 = vor.u32 %v2129_v34, %v1769_v35 }
  0x28   : > { %966 = vmatpush.bf16.msra.mxu3 %v1812_v13  ;;  %v1917_v42 = vld [vmem:[#allocation4 + $0x274] sm:$0xf0]  ;;  %377 = vst.msk [vmem:[#allocation2] sm:$0xf] %vm376_vm0, %v374_v38  ;;  %v2122_v45 = vld [vmem:[#allocation4 + $0x108] sm:$0xf0] }
  0x29   : > { %v1735_v43 = vld [vmem:[#allocation4 + $0xf8] sm:$0xf]  ;;  %378 = vst.msk [vmem:[#allocation2 + $0x8] sm:$0xf] %vm376_vm0, %v375_v39  ;;  %v2162_v49 = vld [vmem:[#allocation4 + $0x248] sm:$0xf0]  ;;  %v1920_v52 = vor.u32 %v2165_v37, %v1917_v42 }
  0x2a   : > { %925 = vmatpush.bf16.msra.mxu0 %v1628_v20  ;;  %v1895_v46 = vld [vmem:[#allocation4 + $0x238] sm:$0xf]  ;;  %v379_v50 = vld [vmem:[%s357_s22] sm:$0xf]  ;;  %v380_v51 = vld [vmem:[%s357_s22 + $0x4] sm:$0xf]  ;;  %v1736_v57 = vor.u32 %v2122_v45, %v1735_v43 }
  0x2b   : > { %939 = vmatpush.bf16.msra.mxu1 %v1788_v25  ;;  %953 = vmatpush.bf16.msra.mxu2 %v1632_v26  ;;  %v2120_v53 = vld [vmem:[#allocation4 + $0xfc] sm:$0xf]  ;;  %v1737_v54 = vld [vmem:[#allocation4 + $0x10c] sm:$0xf0]  ;;  %381 = vst.msk [vmem:[#allocation2 + $0x4] sm:$0xf] %vm376_vm0, %v379_v50  ;;  %v1896_v58 = vor.u32 %v2162_v49, %v1895_v46 }
  0x2c   : > { %967 = vmatpush.bf16.msra.mxu3 %v1792_v30  ;;  %v2160_v55 = vld [vmem:[#allocation4 + $0x23c] sm:$0xf]  ;;  %v1897_v56 = vld [vmem:[#allocation4 + $0x24c] sm:$0xf0]  ;;  %382 = vst.msk [vmem:[#allocation2 + $0xc] sm:$0xf] %vm376_vm0, %v380_v51  ;;  %v1740_v60 = vor.u32 %v2120_v53, %v1737_v54 }
  0x2d   : > { %v1715_v59 = vld [vmem:[#allocation4 + $0xd0] sm:$0xf]  ;;  %v2117_v61 = vld [vmem:[#allocation4 + $0xe0] sm:$0xf0]  ;;  %v1900_v1 = vor.u32 %v2160_v55, %v1897_v56  ;;  %v2115_v3 = vld [vmem:[#allocation4 + $0xd4] sm:$0xf] }
  0x2e   : > { %926 = vmatpush.bf16.msra.mxu0 %v1608_v36  ;;  %v1875_v62 = vld [vmem:[#allocation4 + $0x210] sm:$0xf]  ;;  %v2157_v63 = vld [vmem:[#allocation4 + $0x220] sm:$0xf0]  ;;  %v1717_v4 = vld [vmem:[#allocation4 + $0xe4] sm:$0xf0]  ;;  %v1716_v9 = vor.u32 %v2117_v61, %v1715_v59 }
  0x2f   : > { %940 = vmatpush.bf16.msra.mxu1 %v1768_v40  ;;  %954 = vmatpush.bf16.msra.mxu2 %v1612_v41  ;;  %v1599_v2 = vld [vmem:[#allocation2] sm:$0xf]  ;;  %v2155_v6 = vld [vmem:[#allocation4 + $0x214] sm:$0xf]  ;;  %v1877_v7 = vld [vmem:[#allocation4 + $0x224] sm:$0xf0]  ;;  %v1876_v10 = vor.u32 %v2157_v63, %v1875_v62  ;;  %v1720_v13 = vor.u32 %v2115_v3, %v1717_v4 }
  0x30   : > { %968 = vmatpush.bf16.msra.mxu3 %v1772_v48  ;;  %v2088_v5 = vld [vmem:[#allocation2 + $0x4] sm:$0xf0]  ;;  %v1695_v11 = vld [vmem:[#allocation4 + $0xa8] sm:$0xf]  ;;  %v2112_v12 = vld [vmem:[#allocation4 + $0xb8] sm:$0xf0]  ;;  %v1880_v18 = vor.u32 %v2155_v6, %v1877_v7 }
  0x31   : > { %v2366_v8 = vor.u32 %v2088_v5, %v1599_v2  ;;  %v1855_v15 = vld [vmem:[#allocation4 + $0x1e8] sm:$0xf]  ;;  %v2152_v16 = vld [vmem:[#allocation4 + $0x1f8] sm:$0xf0]  ;;  %v2110_v19 = vld [vmem:[#allocation4 + $0xac] sm:$0xf]  ;;  %v1696_v24 = vor.u32 %v2112_v12, %v1695_v11 }
  0x32   : > { %975 = vmatpush.bf16.msrb.mxu0 %v1756_v44  ;;  %v2087_v14 = vld [vmem:[#allocation2 + $0x4] sm:$0xf]  ;;  %v1697_v20 = vld [vmem:[#allocation4 + $0xbc] sm:$0xf0]  ;;  %v2150_v22 = vld [vmem:[#allocation4 + $0x1ec] sm:$0xf]  ;;  %v1856_v25 = vor.u32 %v2152_v16, %v1855_v15 }
  0x33   : > { %989 = vmatpush.bf16.msrb.mxu1 %v1916_v0  ;;  %1003 = vmatpush.bf16.msrb.mxu2 %v1760_v47  ;;  %v1601_v17 = vld [vmem:[#allocation2 + $0x8] sm:$0xf0]  ;;  %v1857_v23 = vld [vmem:[#allocation4 + $0x1fc] sm:$0xf0]  ;;  %v1700_v27 = vor.u32 %v2110_v19, %v1697_v20  ;;  %v2107_v28 = vld [vmem:[#allocation4 + $0x90] sm:$0xf0] }
  0x34   : > { %1017 = vmatpush.bf16.msrb.mxu3 %v1920_v52  ;;  %955 = vmatmul.bf16.vlgmr.msra.gmra.mxu2 %v2366_v8  ;;  %v2369_v21 = vor.u32 %v2087_v14, %v1601_v17  ;;  %v1675_v26 = vld [vmem:[#allocation4 + $0x80] sm:$0xf]  ;;  %v2147_v30 = vld [vmem:[#allocation4 + $0x1d0] sm:$0xf0]  ;;  %v1860_v31 = vor.u32 %v2150_v22, %v1857_v23  ;;  %v2105_v32 = vld [vmem:[#allocation4 + $0x84] sm:$0xf] }
  0x35   : > { %927 = vmatmul.bf16.vlgmr.msra.gmra.mxu0 %v2366_v8  ;;  %v1835_v29 = vld [vmem:[#allocation4 + $0x1c0] sm:$0xf]  ;;  %v1677_v33 = vld [vmem:[#allocation4 + $0x94] sm:$0xf0]  ;;  %v2145_v34 = vld [vmem:[#allocation4 + $0x1c4] sm:$0xf]  ;;  %v1676_v36 = vor.u32 %v2107_v28, %v1675_v26 }
  0x36   : > { %976 = vmatpush.bf16.msrb.mxu0 %v1736_v57  ;;  %969 = vmatmul.bf16.vlgmr.msra.gmra.mxu3 %v2369_v21  ;;  %v1837_v35 = vld [vmem:[#allocation4 + $0x1d4] sm:$0xf0]  ;;  %v1836_v37 = vor.u32 %v2147_v30, %v1835_v29  ;;  %v1680_v39 = vor.u32 %v2105_v32, %v1677_v33  ;;  %v2102_v40 = vld [vmem:[#allocation4 + $0x68] sm:$0xf0]  ;;  %v2100_v44 = vld [vmem:[#allocation4 + $0x5c] sm:$0xf] }
  0x37   : > { %990 = vmatpush.bf16.msrb.mxu1 %v1896_v58  ;;  %1004 = vmatpush.bf16.msrb.mxu2 %v1740_v60  ;;  %v1655_v38 = vld [vmem:[#allocation4 + $0x58] sm:$0xf]  ;;  %v2142_v42 = vld [vmem:[#allocation4 + $0x1a8] sm:$0xf0]  ;;  %v1840_v43 = vor.u32 %v2145_v34, %v1837_v35  ;;  %v1657_v0 = vld [vmem:[#allocation4 + $0x6c] sm:$0xf0] }
  0x38   : > { %1018 = vmatpush.bf16.msrb.mxu3 %v1900_v1  ;;  %941 = vmatmul.bf16.vlgmr.msra.gmra.mxu1 %v2369_v21  ;;  %v1815_v41 = vld [vmem:[#allocation4 + $0x198] sm:$0xf]  ;;  %v2140_v45 = vld [vmem:[#allocation4 + $0x19c] sm:$0xf]  ;;  %v1817_v46 = vld [vmem:[#allocation4 + $0x1ac] sm:$0xf0]  ;;  %v1656_v47 = vor.u32 %v2102_v40, %v1655_v38  ;;  %v1660_v50 = vor.u32 %v2100_v44, %v1657_v0 }
  0x39   : > { %v1816_v48 = vor.u32 %v2142_v42, %v1815_v41  ;;  %v1635_v49 = vld [vmem:[#allocation4 + $0x30] sm:$0xf]  ;;  %v2097_v51 = vld [vmem:[#allocation4 + $0x40] sm:$0xf0]  ;;  %v1820_v54 = vor.u32 %v2140_v45, %v1817_v46  ;;  %v2095_v55 = vld [vmem:[#allocation4 + $0x34] sm:$0xf] }
  0x3a   : > { %977 = vmatpush.bf16.msrb.mxu0 %v1716_v9  ;;  %v1795_v52 = vld [vmem:[#allocation4 + $0x170] sm:$0xf]  ;;  %v2137_v53 = vld [vmem:[#allocation4 + $0x180] sm:$0xf0]  ;;  %v1637_v56 = vld [vmem:[#allocation4 + $0x44] sm:$0xf0]  ;;  %v1636_v59 = vor.u32 %v2097_v51, %v1635_v49 }
  0x3b   : > { %991 = vmatpush.bf16.msrb.mxu1 %v1876_v10  ;;  %1005 = vmatpush.bf16.msrb.mxu2 %v1720_v13  ;;  %v2135_v57 = vld [vmem:[#allocation4 + $0x174] sm:$0xf]  ;;  %v1797_v58 = vld [vmem:[#allocation4 + $0x184] sm:$0xf0]  ;;  %v1796_v60 = vor.u32 %v2137_v53, %v1795_v52  ;;  %v2092_v62 = vld [vmem:[#allocation4 + $0x18] sm:$0xf0]  ;;  %v1640_v1 = vor.u32 %v2095_v55, %v1637_v56 }
  0x3c   : > { %1019 = vmatpush.bf16.msrb.mxu3 %v1880_v18  ;;  %v1615_v61 = vld [vmem:[#allocation4 + $0x8] sm:$0xf]  ;;  %v2132_v2 = vld [vmem:[#allocation4 + $0x158] sm:$0xf0]  ;;  %v2090_v3 = vld [vmem:[#allocation4 + $0xc] sm:$0xf]  ;;  %v1800_v5 = vor.u32 %v2135_v57, %v1797_v58 }
  0x3d   : > { %v1775_v63 = vld [vmem:[#allocation4 + $0x148] sm:$0xf]  ;;  %v1617_v4 = vld [vmem:[#allocation4 + $0x1c] sm:$0xf0]  ;;  %v2128_v7 = vld [vmem:[#allocation4 + $0x138] sm:$0xf0]  ;;  %v1616_v13 = vor.u32 %v2092_v62, %v1615_v61 }
  0x3e   : > { %978 = vmatpush.bf16.msrb.mxu0 %v1696_v24  ;;  %v1763_v6 = vld [vmem:[#allocation4 + $0x128] sm:$0xf]  ;;  %v2168_v10 = vld [vmem:[#allocation4 + $0x278] sm:$0xf0]  ;;  %v2130_v11 = vld [vmem:[#allocation4 + $0x14c] sm:$0xf]  ;;  %v1776_v14 = vor.u32 %v2132_v2, %v1775_v63  ;;  %v1620_v15 = vor.u32 %v2090_v3, %v1617_v4 }
  0x3f   : > { %992 = vmatpush.bf16.msrb.mxu1 %v1856_v25  ;;  %1006 = vmatpush.bf16.msrb.mxu2 %v1700_v27  ;;  %v1923_v9 = vld [vmem:[#allocation4 + $0x268] sm:$0xf]  ;;  %v1777_v12 = vld [vmem:[#allocation4 + $0x15c] sm:$0xf0]  ;;  %v1764_v16 = vor.u32 %v2128_v7, %v1763_v6  ;;  %v2123_v20 = vld [vmem:[#allocation4 + $0x110] sm:$0xf0] }
  0x40   : > { %1020 = vmatpush.bf16.msrb.mxu3 %v1860_v31  ;;  %v1924_v17 = vor.u32 %v2168_v10, %v1923_v9  ;;  %v1780_v18 = vor.u32 %v2130_v11, %v1777_v12  ;;  %v1743_v19 = vld [vmem:[#allocation4 + $0x100] sm:$0xf]  ;;  %v2163_v23 = vld [vmem:[#allocation4 + $0x250] sm:$0xf0]  ;;  %v2184_v25 = vld [vmem:[%s2529_s5 + $0x78] sm:$0xff]  ;;  %vm1476_vm1 = vcmask 654336  }
  0x41   : > { %v1903_v22 = vld [vmem:[#allocation4 + $0x240] sm:$0xf]  ;;  %v1744_v24 = vor.u32 %v2123_v20, %v1743_v19  ;;  %v1723_v27 = vld [vmem:[#allocation4 + $0xd8] sm:$0xf]  ;;  %v2118_v28 = vld [vmem:[#allocation4 + $0xe8] sm:$0xf0] }
  0x42   : > { %979 = vmatpush.bf16.msrb.mxu0 %v1676_v36  ;;  %v1904_v26 = vor.u32 %v2163_v23, %v1903_v22  ;;  %v2176_v29 = vld [vmem:[%s2529_s5 + $0x38] sm:$0xff]  ;;  %v1883_v30 = vld [vmem:[#allocation4 + $0x218] sm:$0xf]  ;;  %v2183_v32 = vld [vmem:[%s2529_s5 + $0x70] sm:$0xff]  ;;  %v1724_v33 = vor.u32 %v2118_v28, %v1723_v27  ;;  %s1483_s16 = sld [smem:[#allocation3]]  ;;  %s1596_s9 = sshll.u32 %s2534_s15, 3 }
  0x43   : > { %993 = vmatpush.bf16.msrb.mxu1 %v1836_v37  ;;  %1007 = vmatpush.bf16.msrb.mxu2 %v1680_v39  ;;  %v2158_v31 = vld [vmem:[#allocation4 + $0x228] sm:$0xf0]  ;;  %v1703_v35 = vld [vmem:[#allocation4 + $0xb0] sm:$0xf]  ;;  %v2113_v36 = vld [vmem:[#allocation4 + $0xc0] sm:$0xf0]  ;;  %s369_s7 = scalar_lea.vmem %s2532_s8, %s1596_s9 }
  0x44   : > { %1021 = vmatpush.bf16.msrb.mxu3 %v1840_v43  ;;  %v1884_v34 = vor.u32 %v2158_v31, %v1883_v30  ;;  %v2175_v37 = vld [vmem:[%s2529_s5 + $0x30] sm:$0xff]  ;;  %v1863_v38 = vld [vmem:[#allocation4 + $0x1f0] sm:$0xf]  ;;  %v2182_v40 = vld [vmem:[%s2529_s5 + $0x68] sm:$0xff]  ;;  %v1704_v41 = vor.u32 %v2113_v36, %v1703_v35  ;;  %vm1487_vm2 = vcmask 7168  }
  0x45   : > { %v2153_v39 = vld [vmem:[#allocation4 + $0x200] sm:$0xf0]  ;;  %v1683_v43 = vld [vmem:[#allocation4 + $0x88] sm:$0xf]  ;;  %v2108_v44 = vld [vmem:[#allocation4 + $0x98] sm:$0xf0] }
  0x46   : > { %980 = vmatpush.bf16.msrb.mxu0 %v1656_v47  ;;  %v1864_v42 = vor.u32 %v2153_v39, %v1863_v38  ;;  %v2174_v0 = vld [vmem:[%s2529_s5 + $0x28] sm:$0xff]  ;;  %v1843_v45 = vld [vmem:[#allocation4 + $0x1c8] sm:$0xf]  ;;  %v1684_v47 = vor.u32 %v2108_v44, %v1683_v43  ;;  %v1663_v49 = vld [vmem:[#allocation4 + $0x60] sm:$0xf] }
  0x47   : > { %994 = vmatpush.bf16.msrb.mxu1 %v1816_v48  ;;  %1008 = vmatpush.bf16.msrb.mxu2 %v1660_v50  ;;  %v2148_v46 = vld [vmem:[#allocation4 + $0x1d8] sm:$0xf0]  ;;  %v2103_v50 = vld [vmem:[#allocation4 + $0x70] sm:$0xf0]  ;;  %v1823_v52 = vld [vmem:[#allocation4 + $0x1a0] sm:$0xf] }
  0x48   : > { %1022 = vmatpush.bf16.msrb.mxu3 %v1820_v54  ;;  %v1844_v48 = vor.u32 %v2148_v46, %v1843_v45  ;;  %v2173_v51 = vld [vmem:[%s2529_s5 + $0x20] sm:$0xff]  ;;  %v1664_v54 = vor.u32 %v2103_v50, %v1663_v49  ;;  %v1643_v56 = vld [vmem:[#allocation4 + $0x38] sm:$0xf]  ;;  %v2098_v57 = vld [vmem:[#allocation4 + $0x48] sm:$0xf0] }
  0x49   : > { %v2143_v53 = vld [vmem:[#allocation4 + $0x1b0] sm:$0xf0]  ;;  %v1803_v58 = vld [vmem:[#allocation4 + $0x178] sm:$0xf]  ;;  %v1623_v62 = vld [vmem:[#allocation4 + $0x10] sm:$0xf] }
  0x4a   : > { %981 = vmatpush.bf16.msrb.mxu0 %v1636_v59  ;;  %v1824_v55 = vor.u32 %v2143_v53, %v1823_v52  ;;  %v2138_v59 = vld [vmem:[#allocation4 + $0x188] sm:$0xf0]  ;;  %v2093_v63 = vld [vmem:[#allocation4 + $0x20] sm:$0xf0]  ;;  %v2170_v11 = vld [vmem:[%s2529_s5 + $0x8] sm:$0xff] }
  0x4b   : > { %995 = vmatpush.bf16.msrb.mxu1 %v1796_v60  ;;  %1009 = vmatpush.bf16.msrb.mxu2 %v1640_v1  ;;  %v1644_v60 = vor.u32 %v2098_v57, %v1643_v56  ;;  %v1804_v61 = vor.u32 %v2138_v59, %v1803_v58  ;;  %v1783_v1 = vld [vmem:[#allocation4 + $0x150] sm:$0xf]  ;;  %v2133_v2 = vld [vmem:[#allocation4 + $0x160] sm:$0xf0]  ;;  %v1624_v3 = vor.u32 %v2093_v63, %v1623_v62  ;;  %v2172_v6 = vld [vmem:[%s2529_s5 + $0x18] sm:$0xff] }
  0x4c   : > { %1023 = vmatpush.bf16.msrb.mxu3 %v1800_v5  ;;  %v1784_v4 = vor.u32 %v2133_v2, %v1783_v1  ;;  %v2181_v5 = vld [vmem:[%s2529_s5 + $0x60] sm:$0xff]  ;;  %v2180_v7 = vld [vmem:[%s2529_s5 + $0x58] sm:$0xff]  ;;  %v2179_v9 = vld [vmem:[%s2529_s5 + $0x50] sm:$0xff] }
  0x4d   : > { %v2191_v10 = vld [vmem:[%s2529_s5 + $0xb0] sm:$0xff]  ;;  %v2200_v12 = vld [vmem:[%s2529_s5 + $0xf8] sm:$0xff]  ;;  %v2198_v19 = vld [vmem:[%s2529_s5 + $0xe8] sm:$0xff] }
  0x4e   : > { %982 = vmatpush.bf16.msrb.mxu0 %v1616_v13  ;;  %v2178_v13 = vld [vmem:[%s2529_s5 + $0x48] sm:$0xff]  ;;  %v2188_v20 = vld [vmem:[%s2529_s5 + $0x98] sm:$0xff]  ;;  %v2197_v22 = vld [vmem:[%s2529_s5 + $0xe0] sm:$0xff] }
  0x4f   : > { %996 = vmatpush.bf16.msrb.mxu1 %v1776_v14  ;;  %1010 = vmatpush.bf16.msrb.mxu2 %v1620_v15  ;;  %v2190_v14 = vld [vmem:[%s2529_s5 + $0xa8] sm:$0xff]  ;;  %v2169_v15 = vld [vmem:[%s2529_s5] sm:$0xff]  ;;  %v2195_v30 = vld [vmem:[%s2529_s5 + $0xd0] sm:$0xff] }
  0x50   : > { %1024 = vmatpush.bf16.msrb.mxu3 %v1780_v18  ;;  %v2189_v18 = vld [vmem:[%s2529_s5 + $0xa0] sm:$0xff]  ;;  %v2186_v28 = vld [vmem:[%s2529_s5 + $0x88] sm:$0xff]  ;;  %v2208_v35 = vld [vmem:[%s2529_s5 + $0x138] sm:$0xff] }
  0x51   : > { %983 = vmatmul.bf16.vlgmr.msrb.gmra.mxu0 %v2366_v8  ;;  %v2458_v23 = vld [vmem:[%s2528_s4] sm:$0x1f]  ;;  %v2194_v36 = vld [vmem:[%s2529_s5 + $0xc8] sm:$0xff]  ;;  %v2204_v58 = vld [vmem:[%s2529_s5 + $0x118] sm:$0xff] }
  0x52   : > { %1031 = vmatpush.bf16.msra.mxu0 %v1764_v16  ;;  %997 = vmatmul.bf16.vlgmr.msrb.gmra.mxu1 %v2369_v21  ;;  %v2199_v16 = vld [vmem:[%s2529_s5 + $0xf0] sm:$0xff]  ;;  %v2193_v44 = vld [vmem:[%s2529_s5 + $0xc0] sm:$0xff]  ;;  %v2206_v50 = vld [vmem:[%s2529_s5 + $0x128] sm:$0xff]  ;;  %v485_v59 = vperm.slane %v2458_v23, 2  ;;  %v486_v1 = vperm.slane %v2458_v23, 3 }
  0x53   : > { %1045 = vmatpush.bf16.msra.mxu1 %v1924_v17  ;;  %1011 = vmatmul.bf16.vlgmr.msrb.gmra.mxu2 %v2366_v8  ;;  %v2177_v17 = vld [vmem:[%s2529_s5 + $0x40] sm:$0xff]  ;;  %v2203_v62 = vld [vmem:[%s2529_s5 + $0x110] sm:$0xff]  ;;  %v2202_v2 = vld [vmem:[%s2529_s5 + $0x108] sm:$0xff] }
  0x54   : > { %1412 = vmatpush.bf16.msra.mxu3 %v2184_v25  ;;  %1398 = vmatpush.bf16.msra.mxu2 %v2176_v29  ;;  %v2196_v25 = vld [vmem:[%s2529_s5 + $0xd8] sm:$0xff]  ;;  %v2205_v53 = vld [vmem:[%s2529_s5 + $0x120] sm:$0xff] }
  0x55   : > { %1025 = vmatmul.bf16.vlgmr.msrb.gmra.mxu3 %v2369_v21 }
  0x56   : > { %1032 = vmatpush.bf16.msra.mxu0 %v1744_v24  ;;  %v2187_v24 = vld [vmem:[%s2529_s5 + $0x90] sm:$0xff] }
  0x57   : > { %1046 = vmatpush.bf16.msra.mxu1 %v1904_v26  ;;  %v483_v26 = vperm.slane %v2458_v23, 0 }
  0x58   : > { %1413 = vmatpush.bf16.msra.mxu3 %v2183_v32  ;;  %1399 = vmatpush.bf16.msra.mxu2 %v2175_v37  ;;  %v484_v32 = vperm.slane %v2458_v23, 1 }
  0x5a   : > { %1033 = vmatpush.bf16.msra.mxu0 %v1724_v33 }
  0x5b   : > { %1047 = vmatpush.bf16.msra.mxu1 %v1884_v34  ;;  %v2185_v34 = vld [vmem:[%s2529_s5 + $0x80] sm:$0xff] }
  0x5c   : > { %1414 = vmatpush.bf16.msra.mxu3 %v2182_v40  ;;  %1400 = vmatpush.bf16.msra.mxu2 %v2174_v0 }
  0x5e   : > { %1034 = vmatpush.bf16.msra.mxu0 %v1704_v41 }
  0x5f   : > { %1048 = vmatpush.bf16.msra.mxu1 %v1864_v42  ;;  %v2207_v42 = vld [vmem:[%s2529_s5 + $0x130] sm:$0xff] }
  0x60   : > { %1401 = vmatpush.bf16.msra.mxu2 %v2173_v51  ;;  %1415 = vmatpush.bf16.msra.mxu3 %v2181_v5 }
  0x62   : > { %1035 = vmatpush.bf16.msra.mxu0 %v1684_v47 }
  0x63   : > { %1049 = vmatpush.bf16.msra.mxu1 %v1844_v48 }
  0x64   : > { %1402 = vmatpush.bf16.msra.mxu2 %v2172_v6  ;;  %1416 = vmatpush.bf16.msra.mxu3 %v2180_v7 }
  0x66   : > { %1036 = vmatpush.bf16.msra.mxu0 %v1664_v54 }
  0x67   : > { %1050 = vmatpush.bf16.msra.mxu1 %v1824_v55 }
  0x68   : > { %1417 = vmatpush.bf16.msra.mxu3 %v2179_v9  ;;  %v2201_v9 = vld [vmem:[%s2529_s5 + $0x100] sm:$0xff] }
  0x6a   : > { %1037 = vmatpush.bf16.msra.mxu0 %v1644_v60 }
  0x6b   : > { %1051 = vmatpush.bf16.msra.mxu1 %v1804_v61 }
  0x6c   : > { %1418 = vmatpush.bf16.msra.mxu3 %v2178_v13 }
  0x6e   : > { %1038 = vmatpush.bf16.msra.mxu0 %v1624_v3 }
  0x6f   : > { %1052 = vmatpush.bf16.msra.mxu1 %v1784_v4 }
  0x70   : > { %1419 = vmatpush.bf16.msra.mxu3 %v2177_v17 }
  0x71   : > { %1039 = vmatmul.bf16.vlgmr.msra.gmra.mxu0 %v2366_v8  ;;  %v2192_v8 = vld [vmem:[%s2529_s5 + $0xb8] sm:$0xff] }
  0x72   : > { %1053 = vmatmul.bf16.vlgmr.msra.gmra.mxu1 %v2369_v21  ;;  %v2171_v21 = vld [vmem:[%s2529_s5 + $0x10] sm:$0xff]  ;;  %1426 = vmatpush.bf16.msrb.mxu0 %v2192_v8 }
  0x73   : > { %1403 = vmatpush.bf16.msra.mxu2 %v2171_v21  ;;  %1440 = vmatpush.bf16.msrb.mxu1 %v2200_v12 }
  0x76   : > { %1427 = vmatpush.bf16.msrb.mxu0 %v2191_v10 }
  0x77   : > { %1404 = vmatpush.bf16.msra.mxu2 %v2170_v11  ;;  %1441 = vmatpush.bf16.msrb.mxu1 %v2199_v16 }
  0x7a   : > { %1428 = vmatpush.bf16.msrb.mxu0 %v2190_v14 }
  0x7b   : > { %1405 = vmatpush.bf16.msra.mxu2 %v2169_v15  ;;  %1442 = vmatpush.bf16.msrb.mxu1 %v2198_v19 }
  0x7e   : > { %1429 = vmatpush.bf16.msrb.mxu0 %v2189_v18 }
  0x7f   : > { %1443 = vmatpush.bf16.msrb.mxu1 %v2197_v22  ;;  %1454 = vmatpush.bf16.msrb.mxu2 %v2208_v35 }
  0x82   : > { %1430 = vmatpush.bf16.msrb.mxu0 %v2188_v20 }
  0x83   : > { %1444 = vmatpush.bf16.msrb.mxu1 %v2196_v25  ;;  %1455 = vmatpush.bf16.msrb.mxu2 %v2207_v42  ;;  %v487_v25 = vperm.slane %v2458_v23, 4 }
  0x86   : > { %1431 = vmatpush.bf16.msrb.mxu0 %v2187_v24 }
  0x87   : > { %1445 = vmatpush.bf16.msrb.mxu1 %v2195_v30  ;;  %1456 = vmatpush.bf16.msrb.mxu2 %v2206_v50 }
  0x8a   : > { %1432 = vmatpush.bf16.msrb.mxu0 %v2186_v28 }
  0x8b   : > { %1446 = vmatpush.bf16.msrb.mxu1 %v2194_v36  ;;  %1457 = vmatpush.bf16.msrb.mxu2 %v2205_v53 }
  0x8e   : > { %1433 = vmatpush.bf16.msrb.mxu0 %v2185_v34 }
  0x8f   : > { %1447 = vmatpush.bf16.msrb.mxu1 %v2193_v44  ;;  %1458 = vmatpush.bf16.msrb.mxu2 %v2204_v58  ;;  %v2210_v44 = vld [vmem:[%s363_s30] sm:$0xff]  }
  0x93   : > { %1459 = vmatpush.bf16.msrb.mxu2 %v2203_v62 }
  0x97   : > { %1460 = vmatpush.bf16.msrb.mxu2 %v2202_v2 }
  0x9b   : > { %1461 = vmatpush.bf16.msrb.mxu2 %v2201_v9 }
  0xb2   : > { %v928_v27 = vpop.f32.mrf.mxu0 }
  0xb3   : > { %v929_v31 = vadd.f32 %v928_v27, %v483_v26 }
  0xb5   : > { %v942_v29 = vpop.f32.mrf.mxu1 }
  0xb6   : > { %v943_v37 = vadd.f32 %v942_v29, %v929_v31 }
  0xb7   : > { %v956_v33 = vpop.f32.mrf.mxu2 }
  0xb8   : > { %v957_v40 = vadd.f32 %v956_v33, %v484_v32  ;;  %v1059_v0 = vmax.f32 %v943_v37, 0.0  ;;  %v2235_v37 = vld [vmem:[%s2530_s6] ss:$0 sm:$0xff] }
  0xb9   : > { %v970_v38 = vpop.f32.mrf.mxu3 }
  0xba   : > { %v930_v39 = vpop.f32.mrf.mxu0  ;;  %v971_v46 = vadd.f32 %v970_v38, %v957_v40 }
  0xbb   : > { %v931_v41 = vadd.f32 %v930_v39, %v483_v26 }
  0xbc   : > { %v1060_v54 = vmax.f32 %v971_v46, 0.0 }
  0xbd   : > { %v944_v43 = vpop.f32.mrf.mxu1 }
  0xbe   : > { %v945_v45 = vadd.f32 %v944_v43, %v931_v41 }
  0xbf   : > { %v958_v47 = vpop.f32.mrf.mxu2 }
  0xc0   : > { %v1064_v48 = vmax.f32 %v945_v45, 0.0  ;;  %v959_v49 = vadd.f32 %v958_v47, %v484_v32 }
  0xc1   : > { %v972_v52 = vpop.f32.mrf.mxu3 }
  0xc2   : > { %v1069_v51 = vpack.c.bf16 %v1064_v48, %v1059_v0  ;;  %v973_v55 = vadd.f32 %v972_v52, %v959_v49  ;;  %v2211_v49 = vunpack.c.l.bf16 %v2210_v44 }
  0xc4   : > { %1406 = vmatmul.bf16.vlgmr.msra.gmra.mxu2 %v1069_v51  ;;  %v1065_v56 = vmax.f32 %v973_v55, 0.0 }
  0xc6   : > { %v1070_v57 = vpack.c.bf16 %v1065_v56, %v1060_v54 }
  0xc8   : > { %1420 = vmatmul.bf16.vlgmr.msra.gmra.mxu3 %v1070_v57 }
  0xce   : > { %v984_v60 = vpop.f32.mrf.mxu0 }
  0xcf   : > { %v998_v61 = vpop.f32.mrf.mxu1  ;;  %v985_v63 = vadd.f32 %v984_v60, %v485_v59  ;;  %v2212_v60 = vunpack.c.h.bf16 %v2210_v44 }
  0xd1   : > { %v999_v3 = vadd.f32 %v998_v61, %v985_v63 }
  0xd3   : > { %v1061_v10 = vmax.f32 %v999_v3, 0.0 }
  0xd6   : > { %v1012_v4 = vpop.f32.mrf.mxu2  ;;  %v986_v5 = vpop.f32.mrf.mxu0 }
  0xd7   : > { %v987_v7 = vadd.f32 %v986_v5, %v485_v59  ;;  %v1000_v8 = vpop.f32.mrf.mxu1  ;;  %v1013_v21 = vadd.f32 %v1012_v4, %v486_v1 }
  0xd8   : > { %v1026_v6 = vpop.f32.mrf.mxu3 }
  0xd9   : > { %v1001_v11 = vadd.f32 %v1000_v8, %v987_v7  ;;  %v1027_v13 = vadd.f32 %v1026_v6, %v1013_v21 }
  0xdb   : > { %v1066_v12 = vmax.f32 %v1001_v11, 0.0  ;;  %v1062_v18 = vmax.f32 %v1027_v13, 0.0 }
  0xdd   : > { %v1071_v14 = vpack.c.bf16 %v1066_v12, %v1061_v10 }
  0xde   : > { %v1014_v15 = vpop.f32.mrf.mxu2 }
  0xdf   : > { %v1015_v16 = vadd.f32 %v1014_v15, %v486_v1  ;;  %1434 = vmatmul.bf16.vlgmr.msrb.gmra.mxu0 %v1071_v14  ;;  %v1484_v1 = vstv %s1483_s16 }
  0xe0   : > { %v1028_v17 = vpop.f32.mrf.mxu3 }
  0xe1   : > { %v1029_v19 = vadd.f32 %v1028_v17, %v1015_v16 }
  0xe3   : > { %v1067_v20 = vmax.f32 %v1029_v19, 0.0 }
  0xe5   : > { %v1072_v22 = vpack.c.bf16 %v1067_v20, %v1062_v18 }
  0xe7   : > { %1448 = vmatmul.bf16.vlgmr.msrb.gmra.mxu1 %v1072_v22 }
  0xee   : > { %v1040_v24 = vpop.f32.mrf.mxu0 }
  0xef   : > { %v1054_v26 = vpop.f32.mrf.mxu1  ;;  %v1041_v27 = vadd.f32 %v1040_v24, %v487_v25 }
  0xf1   : > { %v1055_v29 = vadd.f32 %v1054_v26, %v1041_v27 }
  0xf3   : > { %v1063_v33 = vmax.f32 %v1055_v29, 0.0 }
  0xf6   : > { %v1042_v28 = vpop.f32.mrf.mxu0 }
  0xf7   : > { %v1043_v30 = vadd.f32 %v1042_v28, %v487_v25  ;;  %v1056_v31 = vpop.f32.mrf.mxu1 }
  0xf9   : > { %v1057_v32 = vadd.f32 %v1056_v31, %v1043_v30 }
  0xfb   : > { %v1068_v34 = vmax.f32 %v1057_v32, 0.0 }
  0xfd   : > { %v1073_v35 = vpack.c.bf16 %v1068_v34, %v1063_v33 }
  0xff   : > { %1462 = vmatmul.bf16.vlgmr.msrb.gmra.mxu2 %v1073_v35 }
 0x147   : > { %v1407_v36 = vpop.f32.mrf.mxu2 }
 0x148   : > { %v1408_v38 = vadd.f32 %v2235_v37, %v1407_v36 }
 0x14b   : > { %v1421_v39 = vpop.f32.mrf.mxu3 }
 0x14c   : > { %v1422_v41 = vadd.f32 %v1421_v39, %v1408_v38 }
 0x14f   : > { %v1409_v23 = vpop.f32.mrf.mxu2 }
 0x150   : > { %v1410_v0 = vadd.f32 %v2235_v37, %v1409_v23 }
 0x153   : > { %v1423_v46 = vpop.f32.mrf.mxu3 }
 0x154   : > { %v1424_v51 = vadd.f32 %v1423_v46, %v1410_v0 }
 0x15c   : > { %v1435_v40 = vpop.f32.mrf.mxu0 }
 0x15d   : > { %v1436_v43 = vadd.f32 %v1435_v40, %v1422_v41 }
 0x164   : > { %v1449_v42 = vpop.f32.mrf.mxu1  ;;  %v1437_v50 = vpop.f32.mrf.mxu0 }
 0x165   : > { %v1450_v45 = vadd.f32 %v1449_v42, %v1436_v43  ;;  %v1438_v54 = vadd.f32 %v1437_v50, %v1424_v51 }
 0x16c   : > { %v1451_v53 = vpop.f32.mrf.mxu1 }
 0x16d   : > { %v1452_v56 = vadd.f32 %v1451_v53, %v1438_v54 }
 0x182   : > { %v1463_v47 = vpop.f32.mrf.mxu2 }
 0x183   : > { %v1464_v48 = vadd.f32 %v1463_v47, %v1450_v45 }
 0x185   : > { %v1468_v52 = vmax.f32 %v1464_v48, 0.0 }
 0x187   : > { %v1474_v55 = vmul.f32 %v2211_v49, %v1468_v52 }
 0x189   : > { %v1477_v57 = vsel %vm1476_vm1, %v1474_v55, 0.0 }
 0x18a   : > { %v1465_v58 = vpop.f32.mrf.mxu2  ;;  %1478 = vadd.xlane.f32.xlu0 %v1477_v57 }
 0x18b   : > { %v1466_v59 = vadd.f32 %v1465_v58, %v1452_v56 }
 0x18d   : > { %v1469_v61 = vmax.f32 %v1466_v59, 0.0 }
 0x18f   : > { %v1475_v62 = vmul.f32 %v2212_v60, %v1469_v61 }
 0x191   : > { %v1480_v63 = vsel %vm1476_vm1, %v1475_v62, 0.0 }
 0x192   : > { %1481 = vadd.xlane.f32.xlu0 %v1480_v63 }
 0x1fd   : > { %v1479_v2 = vpop.xlane.xlu0 %1478 }
 0x1fe   : > { %v1485_v3 = vadd.f32 %v1484_v1, %v1479_v2 }
 0x200   : > { %1488 = vst.msk [vmem:[%s369_s7] sm:$0xff] %vm1487_vm2, %v1485_v3 }
 0x205   : > { %v1482_v4 = vpop.xlane.xlu0 %1481 }
 0x206   : > { %v1486_v5 = vadd.f32 %v1484_v1, %v1482_v4 }
 0x208   : > { %1489 = vst.msk [vmem:[%s369_s7 + $0x8] sm:$0xff] %vm1487_vm2, %v1486_v5 }
 0x209 PF: > { %s20_s29 = sadd.s32 1, %s2276_s29  }
 0x20a   : > { %p17_p7 = scmp.ge.s32.totalorder %s20_s29, 4  }
 0x20c   :  { %19 = sbr.rel (!%p17_p7) target bundleno = 3 (0x3), region = 93 }
 0x211   :  { %1512 = vsyncpa [#allocation5], 1 }
 0x212   :  { %1514 = vsyncpa [#allocation5 + $0x1], 1 }

</bundles_post_ra>
